<compile_context>
chip_gen: v7x
topology: tpu7x:2x2x1
jax: 0.10.0
libtpu: 0.0.40
codegen_flags: <defaults>
</compile_context>

<pallas_src>
import functools

import jax
import jax.numpy as jnp
from jax.experimental import pallas as pl
from jax.experimental.pallas import tpu as pltpu


def _round_up(n, m):
    return ((n + m - 1) // m) * m


def policy_kernel(x_ref, w1_ref, b1_ref, w2_ref, b2_ref, out_ref):
    # hidden = relu(x @ W1 + b1)   (f32 accumulation on the MXU)
    h = jnp.dot(x_ref[...], w1_ref[...], preferred_element_type=jnp.float32)
    h = jnp.maximum(h + b1_ref[...], 0.0)

    # logits = h @ W2 + b2.  Padded action lanes of b2 are -1e30 (kept f32), so
    # exp() of those lanes is exactly 0 and the softmax denominator is exact.
    logits = jnp.dot(h.astype(w2_ref.dtype), w2_ref[...],
                     preferred_element_type=jnp.float32) + b2_ref[...]

    # Numerically stable softmax over the lane-dense (128-wide) action axis.
    m = jnp.max(logits, axis=-1, keepdims=True)
    e = jnp.exp(logits - m)
    denom = jnp.sum(e, axis=-1, keepdims=True)
    # approx=True left ~1e-3 normalization error (previous correctness failure);
    # exact reciprocal is still on the EUP slot and effectively free here.
    out_ref[...] = (e * pl.reciprocal(denom, approx=False)).astype(out_ref.dtype)


def prepare_policy_params(w1, b1, w2, b2, *, use_bf16=True):
    """One-time parameter prep (hoisted out of the per-call forward).

    Pads W2 to a lane-dense multiple of 128 output columns, builds the padded
    bias with a -1e30 sentinel (kept in f32 so it never becomes -inf), and casts
    the weights to the compute dtype.  Call once per weight update; the jitted
    forward only touches the result.
    Returns ((w1_c, b1_f32, w2_c, b2_f32_padded), action_dim).
    """
    state_dim, hidden_dim = w1.shape
    assert w2.shape[0] == hidden_dim
    action_dim = w2.shape[1]
    padded_actions = max(128, _round_up(action_dim, 128))

    compute_dtype = jnp.bfloat16 if use_bf16 else jnp.float32

    b1_p = jnp.asarray(b1, jnp.float32).reshape(1, hidden_dim)
    w2_f = jnp.asarray(w2, jnp.float32)
    w2_p = jnp.zeros((hidden_dim, padded_actions), jnp.float32).at[:, :action_dim].set(w2_f)
    b2_p = jnp.full((1, padded_actions), -1e30, jnp.float32).at[:, :action_dim].set(
        jnp.asarray(b2, jnp.float32).reshape(1, action_dim))

    params = (jnp.asarray(w1, jnp.float32).astype(compute_dtype),
              b1_p,
              w2_p.astype(compute_dtype),
              b2_p)
    params = jax.tree_util.tree_map(lambda a: a.block_until_ready(), params)
    return params, action_dim


@functools.partial(jax.jit, static_argnames=("tm",))
def policy_forward_padded(x, w1, b1, w2, b2, *, tm=None):
    """softmax(relu(x @ w1 + b1) @ w2 + b2), returned as the padded block.

    Output is (padded_batch, padded_actions): columns >= action_dim are exactly
    0, rows >= x.shape[0] are padding.  Returning the padded block avoids an
    extra full HBM read+write for a post-kernel slice.
    """
    batch, state_dim = x.shape
    hidden_dim = w1.shape[1]
    padded_actions = w2.shape[1]
    compute_dtype = w1.dtype
    use_bf16 = compute_dtype == jnp.bfloat16
    out_dtype = jnp.bfloat16 if use_bf16 else jnp.float32

    # Batch tiling: tile rows are a multiple of 16 sublanes on the bf16 path
    # (8 for f32).  Aim for >= 2 grid steps whenever the batch exceeds one tile
    # so v7x's two TensorCores both get work; cap the tile at 512 rows (enough
    # to amortize the ~0.35us per-step overhead on single-TC v5e/v6e).
    align = 16 if use_bf16 else 8
    pb0 = _round_up(max(batch, align), align)
    if tm is None:
        tm = max(align, min(512, _round_up(pl.cdiv(pb0, 2), align)))
    padded_batch = _round_up(pb0, tm)

    if padded_batch != batch:
        x = jnp.pad(x, ((0, padded_batch - batch), (0, 0)))
    x = x.astype(compute_dtype)

    grid = (padded_batch // tm,)

    in_bytes = jnp.dtype(compute_dtype).itemsize
    cost = pl.CostEstimate(
        flops=2 * padded_batch * (state_dim * hidden_dim + hidden_dim * padded_actions),
        transcendentals=padded_batch * padded_actions,
        bytes_accessed=(padded_batch * state_dim * in_bytes
                        + state_dim * hidden_dim * in_bytes
                        + hidden_dim * padded_actions * in_bytes
                        + (hidden_dim + padded_actions) * 4
                        + padded_batch * padded_actions * jnp.dtype(out_dtype).itemsize),
    )

    return pl.pallas_call(
        policy_kernel,
        out_shape=jax.ShapeDtypeStruct((padded_batch, padded_actions), out_dtype),
        grid=grid,
        in_specs=[
            pl.BlockSpec((tm, state_dim), lambda i: (i, 0)),               # x tile
            pl.BlockSpec((state_dim, hidden_dim), lambda i: (0, 0)),       # W1 (VMEM-resident)
            pl.BlockSpec((1, hidden_dim), lambda i: (0, 0)),               # b1 (resident)
            pl.BlockSpec((hidden_dim, padded_actions), lambda i: (0, 0)),  # W2 (resident)
            pl.BlockSpec((1, padded_actions), lambda i: (0, 0)),           # b2 (resident)
        ],
        out_specs=pl.BlockSpec((tm, padded_actions), lambda i: (i, 0)),
        compiler_params=pltpu.CompilerParams(
            dimension_semantics=("parallel",),
        ),
        cost_estimate=cost,
    )(x, w1, b1, w2, b2)


def policy_probs(x, prepped_params, action_dim, *, tm=None):
    """Exact (batch, action_dim) probabilities.

    Note: the slice is a separate XLA copy over the padded block; hot-path
    consumers (sampling / argmax) should read policy_forward_padded's output
    directly (extra columns are exactly 0).
    """
    w1, b1, w2, b2 = prepped_params
    out = policy_forward_padded(x, w1, b1, w2, b2, tm=tm)
    return out[:x.shape[0], :action_dim]


if __name__ == "__main__":
    # Small shapes consistent with the module's forward.
    batch, state_dim, hidden_dim, action_dim = 4, 16, 128, 6

    key = jax.random.PRNGKey(0)
    kx, k1, kb1, k2, kb2 = jax.random.split(key, 5)

    x = jax.random.normal(kx, (batch, state_dim), dtype=jnp.float32)
    # Deterministic synthetic parameters (PyTorch Linear-ish scale).
    w1 = jax.random.uniform(k1, (state_dim, hidden_dim), jnp.float32,
                            -1.0 / state_dim ** 0.5, 1.0 / state_dim ** 0.5)
    b1 = jax.random.uniform(kb1, (1, hidden_dim), jnp.float32,
                            -1.0 / state_dim ** 0.5, 1.0 / state_dim ** 0.5)
    w2 = jax.random.uniform(k2, (hidden_dim, action_dim), jnp.float32,
                            -1.0 / hidden_dim ** 0.5, 1.0 / hidden_dim ** 0.5)
    b2 = jax.random.uniform(kb2, (1, action_dim), jnp.float32,
                            -1.0 / hidden_dim ** 0.5, 1.0 / hidden_dim ** 0.5)

    # Reference forward in plain JAX (f32).
    h_ref = jnp.maximum(x @ w1 + b1, 0.0)
    logits_ref = h_ref @ w2 + b2
    probs_ref = jax.nn.softmax(logits_ref, axis=-1)

    # 1) f32 matmul path (one-time prep hoisted out of the forward).
    params_f32, adim = prepare_policy_params(w1, b1, w2, b2, use_bf16=False)
    probs_f32 = policy_probs(x, params_f32, adim)
    jax.block_until_ready(probs_f32)
    assert probs_f32.shape == (batch, action_dim)
    assert jnp.allclose(probs_f32, probs_ref, atol=1e-3, rtol=1e-3)
    assert jnp.allclose(jnp.sum(probs_f32, axis=-1), 1.0, atol=1e-4)

    # 2) Fast path: bf16 matmuls (f32 accumulation + f32 softmax, bf16 output).
    params_bf16, adim = prepare_policy_params(w1, b1, w2, b2, use_bf16=True)
    probs_bf16 = policy_probs(x, params_bf16, adim)
    jax.block_until_ready(probs_bf16)
    assert probs_bf16.shape == (batch, action_dim)
    assert jnp.allclose(probs_bf16.astype(jnp.float32), probs_ref, atol=2e-2, rtol=2e-2)
    assert jnp.allclose(jnp.sum(probs_bf16.astype(jnp.float32), axis=-1), 1.0, atol=5e-3)

    # TODO(synk): select_action's Categorical sampling / log_prob is host-side
    # stochastic glue, not part of the forward hot path, so it is not kernelized.

    print("KERNEL_OK")
</pallas_src>

<mosaic_0001>
module attributes {stable_mosaic.version = 11 : i64} {
  func.func @policy_kernel(%arg0: i32, %arg1: memref<8x16xf32, #tpu.memory_space<vmem>>, %arg2: memref<16x128xf32, #tpu.memory_space<vmem>>, %arg3: memref<1x128xf32, #tpu.memory_space<vmem>>, %arg4: memref<128x128xf32, #tpu.memory_space<vmem>>, %arg5: memref<1x128xf32, #tpu.memory_space<vmem>>, %arg6: memref<8x128xf32, #tpu.memory_space<vmem>>) attributes {dimension_semantics = [#tpu.dimension_semantics<parallel>], iteration_bounds = array<i64: 1>, scalar_prefetch = 0 : i64, scratch_operands = 0 : i64, tpu.core_type = #tpu.core_type<tc>, window_params = [{transform_indices = @transform_0, window_bounds = array<i64: 8, 16>}, {pipeline_mode = #tpu.pipeline_mode<synchronous>, transform_indices = @transform_1, window_bounds = array<i64: 16, 128>}, {pipeline_mode = #tpu.pipeline_mode<synchronous>, transform_indices = @transform_2, window_bounds = array<i64: 1, 128>}, {pipeline_mode = #tpu.pipeline_mode<synchronous>, transform_indices = @transform_3, window_bounds = array<i64: 128, 128>}, {pipeline_mode = #tpu.pipeline_mode<synchronous>, transform_indices = @transform_4, window_bounds = array<i64: 1, 128>}, {transform_indices = @transform_5, window_bounds = array<i64: 8, 128>}]} {
    %c0 = arith.constant 0 : index
    %c0_0 = arith.constant 0 : index
    %0 = vector.load %arg1[%c0, %c0_0] : memref<8x16xf32, #tpu.memory_space<vmem>>, vector<8x16xf32>
    %c0_1 = arith.constant 0 : index
    %c0_2 = arith.constant 0 : index
    %1 = vector.load %arg2[%c0_1, %c0_2] : memref<16x128xf32, #tpu.memory_space<vmem>>, vector<16x128xf32>
    %cst = arith.constant dense<0.000000e+00> : vector<8x128xf32>
    %2 = tpu.matmul %0, %1, %cst {dimension_numbers = #tpu.dot_dimension_numbers<[1], [0], [0], [1], [0, 0, 1, 1], [], []>} : vector<8x16xf32>, vector<16x128xf32>, vector<8x128xf32> -> vector<8x128xf32>
    %c0_3 = arith.constant 0 : index
    %c0_4 = arith.constant 0 : index
    %3 = vector.load %arg3[%c0_3, %c0_4] : memref<1x128xf32, #tpu.memory_space<vmem>>, vector<1x128xf32>
    %4 = vector.broadcast %3 : vector<1x128xf32> to vector<8x128xf32>
    %5 = arith.addf %2, %4 : vector<8x128xf32>
    %cst_5 = arith.constant 0.000000e+00 : f32
    %6 = vector.broadcast %cst_5 : f32 to vector<8x128xf32>
    %7 = arith.maximumf %5, %6 : vector<8x128xf32>
    %c0_6 = arith.constant 0 : index
    %c0_7 = arith.constant 0 : index
    %8 = vector.load %arg4[%c0_6, %c0_7] : memref<128x128xf32, #tpu.memory_space<vmem>>, vector<128x128xf32>
    %cst_8 = arith.constant dense<0.000000e+00> : vector<8x128xf32>
    %9 = tpu.matmul %7, %8, %cst_8 {dimension_numbers = #tpu.dot_dimension_numbers<[1], [0], [0], [1], [0, 0, 1, 1], [], []>} : vector<8x128xf32>, vector<128x128xf32>, vector<8x128xf32> -> vector<8x128xf32>
    %c0_9 = arith.constant 0 : index
    %c0_10 = arith.constant 0 : index
    %10 = vector.load %arg5[%c0_9, %c0_10] : memref<1x128xf32, #tpu.memory_space<vmem>>, vector<1x128xf32>
    %11 = vector.broadcast %10 : vector<1x128xf32> to vector<8x128xf32>
    %12 = arith.addf %9, %11 : vector<8x128xf32>
    %cst_11 = arith.constant dense<0xFF800000> : vector<8xf32>
    %13 = vector.multi_reduction <maximumf>, %12, %cst_11 [1] : vector<8x128xf32> to vector<8xf32>
    %14 = vector.shape_cast %13 : vector<8xf32> to vector<8x1xf32>
    %15 = vector.broadcast %14 : vector<8x1xf32> to vector<8x128xf32>
    %16 = arith.subf %12, %15 : vector<8x128xf32>
    %17 = math.exp %16 : vector<8x128xf32>
    %cst_12 = arith.constant dense<0.000000e+00> : vector<8xf32>
    %18 = vector.multi_reduction <add>, %17, %cst_12 [1] : vector<8x128xf32> to vector<8xf32>
    %19 = vector.shape_cast %18 : vector<8xf32> to vector<8x1xf32>
    %20 = tpu.reciprocal %19 : vector<8x1xf32> -> vector<8x1xf32>
    %21 = vector.broadcast %20 : vector<8x1xf32> to vector<8x128xf32>
    %22 = arith.mulf %17, %21 : vector<8x128xf32>
    %c0_13 = arith.constant 0 : index
    %c0_14 = arith.constant 0 : index
    %23 = vector.load %arg6[%c0_13, %c0_14] : memref<8x128xf32, #tpu.memory_space<vmem>>, vector<8x128xf32>
    tpu.vector_store %arg6[%c0_13, %c0_14], %22 {strides = array<i32>} : memref<8x128xf32, #tpu.memory_space<vmem>>, vector<8x128xf32>,
    return
  }
  func.func @transform_0(%arg0: i32) -> (i32, i32) {
    %c0_i32 = arith.constant 0 : i32
    %c0_i32_0 = arith.constant 0 : i32
    return %arg0, %c0_i32 : i32, i32
  }
  func.func @transform_1(%arg0: i32) -> (i32, i32) {
    %c0_i32 = arith.constant 0 : i32
    %c0_i32_0 = arith.constant 0 : i32
    %c0_i32_1 = arith.constant 0 : i32
    return %c0_i32, %c0_i32_0 : i32, i32
  }
  func.func @transform_2(%arg0: i32) -> (i32, i32) {
    %c0_i32 = arith.constant 0 : i32
    %c0_i32_0 = arith.constant 0 : i32
    %c0_i32_1 = arith.constant 0 : i32
    return %c0_i32, %c0_i32_0 : i32, i32
  }
  func.func @transform_3(%arg0: i32) -> (i32, i32) {
    %c0_i32 = arith.constant 0 : i32
    %c0_i32_0 = arith.constant 0 : i32
    %c0_i32_1 = arith.constant 0 : i32
    return %c0_i32, %c0_i32_0 : i32, i32
  }
  func.func @transform_4(%arg0: i32) -> (i32, i32) {
    %c0_i32 = arith.constant 0 : i32
    %c0_i32_0 = arith.constant 0 : i32
    %c0_i32_1 = arith.constant 0 : i32
    return %c0_i32, %c0_i32_0 : i32, i32
  }
  func.func @transform_5(%arg0: i32) -> (i32, i32) {
    %c0_i32 = arith.constant 0 : i32
    %c0_i32_0 = arith.constant 0 : i32
    return %arg0, %c0_i32 : i32, i32
  }
}

</mosaic_0001>

<bundles_post_ra>
// kernel: policy_forward_padded.1
= control target key start
LH: loop header
LB: loop body
LE: loop exit
PB: predicated region body
PF: predicated region fallthrough
CT: control target
= control target key end

     0   :  { %10 = vsyncpa [#allocation3], 0  ;;  %s465_s0 = inlined_call_operand.vmem [shape: f32[8,16], index: 0, kind: input, shape index: {}]   ;;  %s466_s1 = inlined_call_operand.vmem [shape: f32[16,128], index: 1, kind: input, shape index: {}]   ;;  %s467_s2 = inlined_call_operand.vmem [shape: f32[1,128], index: 2, kind: input, shape index: {}]   ;;  %s468_s3 = inlined_call_operand.hbm [shape: f32[128,128], index: 3, kind: input, shape index: {}]   ;;  %s469_s4 = inlined_call_operand.vmem [shape: f32[1,128], index: 4, kind: input, shape index: {}]   ;;  %s470_s5 = inlined_call_operand.hbm [shape: f32[8,128], index: 5, kind: output, shape index: {}]  }
   0x1   :  { %11 = vsyncpa [#allocation4], 0  ;;  %s389_s18 = smov [#allocation2]   ;;  %s341_s22 = scalar_lea.hbm %s468_s3, 2048 }
   0x2   :  { %s23_s19 = sshll.u32 %s389_s18, 4  ;;  %p342_p0 = scmp.ne.s32.totalorder %s468_s3, %s341_s22  ;;  %s24_s19 = int_to_ptr.vmem [resolvable:$true] %s23_s19 }
   0x3   :  { %p345_p1 = scmp.lt.u32.totalorder %s341_s22, %s468_s3 }
   0x5   :  { %p347_p2 = pnand %p345_p1, %p342_p0 }
   0x7   :  { %350 = shalt.err (!%p347_p2)
}
   0x8   :  { %s351_s27 = scalar_lea.vmem %s24_s19, 2048  ;;  %p356_p4 = scmp.lt.s32.totalorder %s24_s19, %s24_s19 }
   0x9   :  { %p352_p3 = scmp.ne.s32.totalorder %s24_s19, %s351_s27  ;;  %p357_p5 = scmp.lt.s32.totalorder %s351_s27, %s351_s27 }
   0xb   :  { %p358_p6 = por %p357_p5, %p356_p4 }
   0xd   :  { %p359_p7 = pnand %p358_p6, %p352_p3 }
   0xf   :  { %362 = shalt.err (!%p359_p7)
}
  0x10   :  { %s390_s28 = smov 128   ;;  %s391_s29 = smov 8  }
  0x11   :  { %29 = dma.hbm_to_vmem [thread:$0]  %s468_s3, 2048, %s24_s19, [#allocation3], %s390_s28, %s390_s28, %s391_s29  }
  0x12   :  { %385 = dma.done.wait [#allocation3], 2048  }
  0x13   :  { %386 = vsyncadd [#allocation3], 4294965248  ;;  %v392_v0 = vmov 0.0|0.0   ;;  %vm393_vm0 = vmmov 0   ;;  %v394_v1 = vmov 0.0   ;;  %v36_v2 = vld [vmem:[%s466_s1] sm:$0xff] }
  0x14   :  { %303 = vmatprep.subr.bf16.mxu0 %v392_v0  ;;  %265 = vmatprep.mubr.msk.f32.mxu0 %vm393_vm0, %v394_v1  ;;  %v37_v3 = vld [vmem:[%s466_s1 + $0x8] sm:$0xff]  ;;  %v120_v5 = vld [vmem:[#allocation2] sm:$0xff]  ;;  %v121_v6 = vld [vmem:[#allocation2 + $0x8] sm:$0xff]  ;;  %vm45_vm1 = vcmask 130048  }
  0x15   :  { %306 = vmatprep.subr.bf16.mxu1 %v392_v0  ;;  %300 = vmatprep.mubr.msk.f32.mxu1 %vm393_vm0, %v394_v1  ;;  %v304_v4 = vpack.c.bf16 %v37_v3, %v36_v2  ;;  %v122_v7 = vld [vmem:[#allocation2 + $0x10] sm:$0xff]  ;;  %v307_v8 = vpack.c.bf16 %v121_v6, %v120_v5  ;;  %v123_v9 = vld [vmem:[#allocation2 + $0x18] sm:$0xff]  ;;  %v124_v12 = vld [vmem:[#allocation2 + $0x20] sm:$0xff] }
  0x16   :  { %v35_v10 = vld [vmem:[%s465_s0] sm:$0xff]  ;;  %v310_v11 = vpack.c.bf16 %v123_v9, %v122_v7  ;;  %v125_v13 = vld [vmem:[#allocation2 + $0x28] sm:$0xff]  ;;  %v127_v16 = vld [vmem:[#allocation2 + $0x38] sm:$0xff] }
  0x17   :  { %305 = vmatpush3.bf16.msra.mxu0 %v304_v4  ;;  %308 = vmatpush3.bf16.msra.mxu1 %v307_v8  ;;  %v313_v14 = vpack.c.bf16 %v125_v13, %v124_v12  ;;  %v126_v15 = vld [vmem:[#allocation2 + $0x30] sm:$0xff]  ;;  %v128_v18 = vld [vmem:[#allocation2 + $0x40] sm:$0xff]  ;;  %v129_v19 = vld [vmem:[#allocation2 + $0x48] sm:$0xff] }
  0x18   :  { %309 = vmatprep.subr.bf16.mxu1 %v392_v0  ;;  %v316_v17 = vpack.c.bf16 %v127_v16, %v126_v15  ;;  %v319_v20 = vpack.c.bf16 %v129_v19, %v128_v18  ;;  %v130_v21 = vld [vmem:[#allocation2 + $0x50] sm:$0xff]  ;;  %v131_v22 = vld [vmem:[#allocation2 + $0x58] sm:$0xff]  ;;  %v132_v24 = vld [vmem:[#allocation2 + $0x60] sm:$0xff] }
  0x19   :  { %v322_v23 = vpack.c.bf16 %v131_v22, %v130_v21  ;;  %v133_v25 = vld [vmem:[#allocation2 + $0x68] sm:$0xff]  ;;  %v134_v27 = vld [vmem:[#allocation2 + $0x70] sm:$0xff]  ;;  %v135_v28 = vld [vmem:[#allocation2 + $0x78] sm:$0xff] }
  0x1a   :  { %266 = vmatmul.mubr.msk.f32.vlgmr.msra.gmra.mrb[0].mxu0 %vm45_vm1, %v35_v10  ;;  %v325_v26 = vpack.c.bf16 %v133_v25, %v132_v24  ;;  %v328_v29 = vpack.c.bf16 %v135_v28, %v134_v27  ;;  %v238_v30 = vld [vmem:[%s467_s2] ss:$0 sm:$0xff]  ;;  %s395_s2 = smov [#allocation5]  }
  0x1b   :  { %311 = vmatpush3.bf16.msra.mxu1 %v310_v11  ;;  %v240_v35 = vld [vmem:[%s469_s4] ss:$0 sm:$0xff]  ;;  %s229_s14 = sshll.u32 %s395_s2, 4  ;;  %s230_s14 = int_to_ptr.vmem [resolvable:$true] %s229_s14 }
  0x1c   :  { %312 = vmatprep.subr.bf16.mxu1 %v392_v0  ;;  %s363_s15 = scalar_lea.vmem %s230_s14, 128  ;;  %p368_p9 = scmp.lt.s32.totalorder %s230_s14, %s230_s14 }
  0x1d   :  { %p364_p8 = scmp.ne.s32.totalorder %s230_s14, %s363_s15  ;;  %p369_p10 = scmp.lt.s32.totalorder %s363_s15, %s363_s15 }
  0x1f   :  { %314 = vmatpush3.bf16.msra.mxu1 %v313_v14  ;;  %p370_p11 = por %p369_p10, %p368_p9 }
  0x20   :  { %315 = vmatprep.subr.bf16.mxu1 %v392_v0 }
  0x21   :  { %p371_p12 = pnand %p370_p11, %p364_p8 }
  0x23   :  { %317 = vmatpush3.bf16.msra.mxu1 %v316_v17 }
  0x24   :  { %318 = vmatprep.subr.bf16.mxu1 %v392_v0 }
  0x27   :  { %320 = vmatpush3.bf16.msra.mxu1 %v319_v20 }
  0x28   :  { %321 = vmatprep.subr.bf16.mxu1 %v392_v0 }
  0x2b   :  { %323 = vmatpush3.bf16.msra.mxu1 %v322_v23 }
  0x2c   :  { %324 = vmatprep.subr.bf16.mxu1 %v392_v0 }
  0x2f   :  { %326 = vmatpush3.bf16.msra.mxu1 %v325_v26 }
  0x30   :  { %327 = vmatprep.subr.bf16.mxu1 %v392_v0 }
  0x33   :  { %329 = vmatpush3.bf16.msra.mxu1 %v328_v29 }
  0xed   :  { %v115_v31 = vpop.f32.mrb[0].mxu0 }
  0xee   :  { %v116_v32 = vadd.f32 %v238_v30, %v115_v31  ;;  %v267_v33 = vpop.f32.mrb[1].mxu0 }
  0xf0   :  { %v119_v34 = vmax.f32 %v116_v32, 0.0 }
  0xf2   :  { %301 = vmatmul.mubr.f32.vlgmr.msra.gmra.mrb[0].mxu1 %v119_v34 }
 0x1c5   :  { %v209_v36 = vpop.f32.mrb[0].mxu1 }
 0x1c6   :  { %v210_v37 = vadd.f32 %v240_v35, %v209_v36  ;;  %v302_v38 = vpop.f32.mrb[1].mxu1 }
 0x1c8   :  { %213 = vmax.xlane.f32.xlu0 %v210_v37 }
 0x255   :  { %v214_v39 = vpop.xlane.xlu0 %213 }
 0x256   :  { %v215_v40 = vsub.f32 %v210_v37, %v214_v39 }
 0x258   :  { %v216_v41 = vmul.f32 1.442695, %v215_v40 }
 0x25a   :  { %337 = vpow2.f32 %v216_v41 }
 0x264   :  { %v338_v42 = vpop.eup %337 }
 0x265   :  { %218 = vadd.xlane.f32.xlu0 %v338_v42 }
 0x2f2   :  { %v219_v43 = vpop.xlane.xlu0 %218 }
 0x2f3   :  { %339 = vrcp.f32 %v219_v43 }
 0x2fd   :  { %v340_v44 = vpop.eup %339 }
 0x2fe   :  { %v221_v45 = vmul.f32 %v340_v44, %v338_v42 }
 0x300   :  { %222 = vst [vmem:[#allocation5] sm:$0xff] %v221_v45 }
 0x301   :  { %374 = shalt.err (!%p371_p12)
}
 0x302   :  { %s375_s17 = scalar_lea.hbm %s470_s5, 128 }
 0x303   :  { %p376_p13 = scmp.ne.s32.totalorder %s470_s5, %s375_s17  ;;  %p379_p0 = scmp.lt.u32.totalorder %s375_s17, %s470_s5 }
 0x305   :  { %p381_p1 = pnand %p379_p0, %p376_p13 }
 0x307   :  { %384 = shalt.err (!%p381_p1)
}
 0x308   :  { %232 = dma.vmem_to_hbm [thread:$0]  %s230_s14, 128, %s470_s5, [#allocation4]  }
 0x309   :  { %387 = dma.done.wait [#allocation4], 128  }
 0x30a   :  { %388 = vsyncadd [#allocation4], 4294967168 }
 0x30b   :  { %236 = vsyncpa [#allocation3], 1 }
 0x30c   :  { %237 = vsyncpa [#allocation4], 1 }

</bundles_post_ra>
